<compile_context>
chip_gen: v7x
topology: tpu7x:2x2x1
jax: 0.10.0
libtpu: 0.0.40
codegen_flags: <defaults>
</compile_context>

<pallas_src>
import functools

import jax
import jax.numpy as jnp
from jax.experimental import pallas as pl
from jax.experimental.pallas import tpu as pltpu


_LANE = 128
_VMEM_CAP_BYTES = 56 * 1024 * 1024          # stay under v7x's 64 MiB physical VMEM
_RESIDENT_BUDGET_BYTES = 40 * 1024 * 1024   # gate for fully-resident Theta1 / pre_sup


def _round_up(x, m):
    return ((x + m - 1) // m) * m


def _pick_tm(n_pad, cap=512):
    """Largest multiple-of-128 row tile <= cap dividing n_pad, preferring >= 2 row tiles
    so the 'parallel' grid axis can feed both TensorCores on v7x."""
    best = n_pad
    for t in range(min(n_pad, cap), 0, -_LANE):
        if n_pad % t == 0:
            if n_pad // t >= 2:
                return t
            best = min(best, t)
    return best


def _pick_tk(n_pad, cap=2048):
    """Largest multiple-of-128 K tile <= cap that divides n_pad."""
    t = min(n_pad, cap)
    while n_pad % t != 0:
        t -= _LANE
    return t


# ---------------------------------------------------------------------------
# Stage 1: pre_sup = ReLU(A @ Theta1) @ Theta2      grid = (row_tiles, k_tiles)
# ---------------------------------------------------------------------------
def _gcn_stage1_kernel(a_ref, th1_ref, th2_ref, ps_ref, acc_ref, *, tk):
    k = pl.program_id(1)

    @pl.when(k == 0)
    def _():
        acc_ref[...] = jnp.zeros_like(acc_ref)

    if th1_ref.shape[0] == tk:
        # Strip-pipelined Theta1 (large-N fallback): the block IS the K strip.
        th1_strip = th1_ref[...]
    else:
        # VMEM-resident Theta1 (DMA'd once): slice the K strip in-kernel.
        k_start = pl.multiple_of(k * tk, tk)
        th1_strip = th1_ref[pl.ds(k_start, tk), :]

    # bf16 x bf16 -> f32 accumulate on the MXU.
    acc_ref[...] += jnp.dot(a_ref[...], th1_strip, preferred_element_type=jnp.float32)

    @pl.when(k == pl.num_programs(1) - 1)
    def _():
        h1 = jnp.maximum(acc_ref[...], 0.0)  # ReLU stays on the f32 accumulator
        ps_ref[...] = jnp.dot(
            h1.astype(th2_ref.dtype), th2_ref[...],
            preferred_element_type=jnp.float32,
        ).astype(ps_ref.dtype)


# ---------------------------------------------------------------------------
# Stage 2: out = A @ pre_sup                        grid = (row_tiles, k_tiles)
# ---------------------------------------------------------------------------
def _gcn_stage2_kernel(a_ref, ps_ref, out_ref, acc_ref, *, tk):
    k = pl.program_id(1)

    @pl.when(k == 0)
    def _():
        acc_ref[...] = jnp.zeros_like(acc_ref)

    if ps_ref.shape[0] == tk:
        ps_strip = ps_ref[...]                     # strip-pipelined fallback
    else:
        k_start = pl.multiple_of(k * tk, tk)       # VMEM-resident pre_sup
        ps_strip = ps_ref[pl.ds(k_start, tk), :]

    acc_ref[...] += jnp.dot(a_ref[...], ps_strip, preferred_element_type=jnp.float32)

    @pl.when(k == pl.num_programs(1) - 1)
    def _():
        out_ref[...] = acc_ref[...].astype(out_ref.dtype)


# ---------------------------------------------------------------------------
# Forward factory (pads / casts once per graph, returns a jitted forward)
# ---------------------------------------------------------------------------
def make_gcn_forward(a_tilde, theta1, theta2, *,
                     compute_dtype=jnp.bfloat16,
                     tm=None, tk=None,
                     resident_budget_bytes=_RESIDENT_BUDGET_BYTES):
    """Build the GCN forward for one fixed graph.

    The lane-dense zero-pad + bf16 cast of A / Theta1 / Theta2 happens ONCE here
    (A_tilde is static per graph), not on every call, so per-call HBM traffic is
    only the two kernel passes over A.
    Returned forward(x=None) ignores x (layer1 is featureless).
    """
    n = a_tilde.shape[0]
    h = theta1.shape[1]
    c = theta2.shape[1]

    n_pad = max(_round_up(n, _LANE), _LANE)   # pad only to 128 -> minimal wasted A area
    h_pad = max(_round_up(h, _LANE), _LANE)   # 200 -> 256
    c_pad = max(_round_up(c, _LANE), _LANE)   # 10  -> 128

    tm = _pick_tm(n_pad) if tm is None else tm
    tk = _pick_tk(n_pad) if tk is None else tk
    assert n_pad % tm == 0 and n_pad % tk == 0, (n_pad, tm, tk)

    # One-time pad + cast (zeros contribute nothing to the matmuls; ReLU(0)=0).
    a_p = jnp.zeros((n_pad, n_pad), compute_dtype).at[:n, :n].set(
        a_tilde.astype(compute_dtype))
    t1_p = jnp.zeros((n_pad, h_pad), compute_dtype).at[:n, :h].set(
        theta1.astype(compute_dtype))
    t2_p = jnp.zeros((h_pad, c_pad), compute_dtype).at[:h, :c].set(
        theta2.astype(compute_dtype))

    # --- VMEM budgeting: keep Theta1 / pre_sup fully resident when they fit ----------
    esz = jnp.dtype(compute_dtype).itemsize            # 2 bytes
    a_dbuf = 2 * tm * tk * esz                         # double-buffered A tile
    th2_buf = 2 * h_pad * c_pad * esz
    out1_dbuf = 2 * tm * c_pad * esz
    acc1 = tm * h_pad * 4
    out2_dbuf = 2 * tm * c_pad * 4
    acc2 = tm * c_pad * 4

    def stage1_bytes(resident):
        th1 = (2 * n_pad * h_pad * esz) if resident else (2 * tk * h_pad * esz)
        return a_dbuf + th1 + th2_buf + out1_dbuf + acc1

    def stage2_bytes(resident):
        ps = (2 * n_pad * c_pad * esz) if resident else (2 * tk * c_pad * esz)
        return a_dbuf + ps + out2_dbuf + acc2

    resident1 = stage1_bytes(True) <= resident_budget_bytes
    resident2 = stage2_bytes(True) <= resident_budget_bytes

    vmem_est = max(stage1_bytes(resident1), stage2_bytes(resident2))
    vmem_limit = int(min(_VMEM_CAP_BYTES,
                         max(32 * 1024 * 1024, vmem_est + 8 * 1024 * 1024)))

    grid = (n_pad // tm, n_pad // tk)

    if resident1:
        th1_spec = pl.BlockSpec((n_pad, h_pad), lambda i, k: (0, 0))   # resident (DMA once)
    else:
        th1_spec = pl.BlockSpec((tk, h_pad), lambda i, k: (k, 0))      # strip-pipelined
    if resident2:
        ps_spec = pl.BlockSpec((n_pad, c_pad), lambda i, k: (0, 0))
    else:
        ps_spec = pl.BlockSpec((tk, c_pad), lambda i, k: (k, 0))

    flops1 = 2 * n_pad * n_pad * h_pad + 2 * n_pad * h_pad * c_pad
    flops2 = 2 * n_pad * n_pad * c_pad
    bytes1 = esz * (n_pad * n_pad + n_pad * h_pad + h_pad * c_pad + n_pad * c_pad)
    bytes2 = esz * (n_pad * n_pad + n_pad * c_pad) + 4 * n_pad * c_pad

    # TODO(synk): if a profile shows exposed DMA at this tile size (wall >> MXU time),
    # add pipeline_mode=pl.Buffered(3) on the A-tile BlockSpecs below.

    stage1 = pl.pallas_call(
        functools.partial(_gcn_stage1_kernel, tk=tk),
        out_shape=jax.ShapeDtypeStruct((n_pad, c_pad), compute_dtype),
        grid_spec=pltpu.PrefetchScalarGridSpec(
            num_scalar_prefetch=0,
            grid=grid,
            in_specs=[
                pl.BlockSpec((tm, tk), lambda i, k: (i, k)),        # A row/col tile
                th1_spec,                                           # Theta1
                pl.BlockSpec((h_pad, c_pad), lambda i, k: (0, 0)),  # Theta2 (resident)
            ],
            out_specs=pl.BlockSpec((tm, c_pad), lambda i, k: (i, 0)),
            scratch_shapes=[pltpu.VMEM((tm, h_pad), jnp.float32)],
        ),
        compiler_params=pltpu.CompilerParams(
            dimension_semantics=("parallel", "arbitrary"),
            vmem_limit_bytes=vmem_limit,
        ),
        cost_estimate=pl.CostEstimate(
            flops=flops1, transcendentals=0, bytes_accessed=bytes1),
    )

    stage2 = pl.pallas_call(
        functools.partial(_gcn_stage2_kernel, tk=tk),
        out_shape=jax.ShapeDtypeStruct((n_pad, c_pad), jnp.float32),
        grid_spec=pltpu.PrefetchScalarGridSpec(
            num_scalar_prefetch=0,
            grid=grid,
            in_specs=[
                pl.BlockSpec((tm, tk), lambda i, k: (i, k)),        # A row/col tile
                ps_spec,                                            # pre_sup
            ],
            out_specs=pl.BlockSpec((tm, c_pad), lambda i, k: (i, 0)),
            scratch_shapes=[pltpu.VMEM((tm, c_pad), jnp.float32)],
        ),
        compiler_params=pltpu.CompilerParams(
            dimension_semantics=("parallel", "arbitrary"),
            vmem_limit_bytes=vmem_limit,
        ),
        cost_estimate=pl.CostEstimate(
            flops=flops2, transcendentals=0, bytes_accessed=bytes2),
    )

    @jax.jit
    def _fwd(a_pad, t1_pad, t2_pad):
        pre_sup = stage1(a_pad, t1_pad, t2_pad)       # (n_pad, c_pad) bf16
        out_pad = stage2(a_pad, pre_sup)              # (n_pad, c_pad) f32
        return out_pad[:n, :c]

    def forward(x=None):   # x accepted for API parity; unused (featureless layer1)
        del x
        return _fwd(a_p, t1_p, t2_p)

    return forward


# ---------------------------------------------------------------------------
# Reference & checks
# ---------------------------------------------------------------------------
def gcn_reference(a_tilde, theta1, theta2):
    h1 = jnp.maximum(a_tilde @ theta1, 0.0)
    return a_tilde @ (h1 @ theta2)


def _check(num_nodes, hidden, num_classes, key, **kwargs):
    k_a, k_t1, k_t2, k_x = jax.random.split(key, 4)
    a_tilde = jax.random.normal(k_a, (num_nodes, num_nodes), dtype=jnp.float32)
    theta1 = jax.random.normal(k_t1, (num_nodes, hidden), dtype=jnp.float32)
    theta2 = jax.random.normal(k_t2, (hidden, num_classes), dtype=jnp.float32)
    x = jax.random.normal(k_x, (num_nodes, num_nodes), dtype=jnp.float32)  # unused

    fwd = make_gcn_forward(a_tilde, theta1, theta2, **kwargs)
    out = jax.block_until_ready(fwd(x))
    ref = gcn_reference(a_tilde, theta1, theta2)

    assert out.shape == (num_nodes, num_classes)
    # bf16 operands / f32 accumulation -> loosened tolerance vs the f32 reference.
    rel_err = float(jnp.max(jnp.abs(out - ref)) / (jnp.max(jnp.abs(ref)) + 1e-6))
    assert rel_err < 3e-2, f"Pallas GCN mismatch vs reference (rel_err={rel_err})"


if __name__ == "__main__":
    key = jax.random.PRNGKey(0)
    k1, k2, k3 = jax.random.split(key, 3)

    # Module-consistent small shapes: featureless layer1 => input_dim == N.
    hidden, num_classes = 200, 10

    # 1) Tiny graph (N=16): single tile, fully-resident path.
    _check(16, hidden, num_classes, k1)
    # 2) Multi-tile K reduction with VMEM-resident Theta1/pre_sup (in-kernel pl.ds slicing).
    _check(384, hidden, num_classes, k2, tk=128)
    # 3) Strip-pipelined fallback (residency forced off), exercising the large-N structure.
    _check(384, hidden, num_classes, k3, tk=128, resident_budget_bytes=0)

    print("KERNEL_OK")
</pallas_src>

<mosaic_0001>
module attributes {stable_mosaic.version = 11 : i64} {
  func.func @_gcn_stage1_kernel(%arg0: i32, %arg1: i32, %arg2: memref<128x128xbf16, #tpu.memory_space<vmem>>, %arg3: memref<128x256xbf16, #tpu.memory_space<vmem>>, %arg4: memref<256x128xbf16, #tpu.memory_space<vmem>>, %arg5: memref<128x128xbf16, #tpu.memory_space<vmem>>, %arg6: memref<128x256xf32, #tpu.memory_space<vmem>>) attributes {dimension_semantics = [#tpu.dimension_semantics<parallel>, #tpu.dimension_semantics<arbitrary>], iteration_bounds = array<i64: 1, 1>, scalar_prefetch = 0 : i64, scratch_operands = 1 : i64, tpu.core_type = #tpu.core_type<tc>, window_params = [{transform_indices = @transform_0, window_bounds = array<i64: 128, 128>}, {pipeline_mode = #tpu.pipeline_mode<synchronous>, transform_indices = @transform_1, window_bounds = array<i64: 128, 256>}, {pipeline_mode = #tpu.pipeline_mode<synchronous>, transform_indices = @transform_2, window_bounds = array<i64: 256, 128>}, {transform_indices = @transform_3, window_bounds = array<i64: 128, 128>}]} {
    %c0_i32 = arith.constant 0 : i32
    %0 = arith.cmpi eq, %arg1, %c0_i32 : i32
    %1 = arith.extui %0 : i1 to i32
    %c0_i32_0 = arith.constant 0 : i32
    %2 = arith.cmpi ne, %1, %c0_i32_0 : i32
    scf.if %2 {
      %cst_10 = arith.constant 0.000000e+00 : f32
      %12 = vector.broadcast %cst_10 : f32 to vector<128x256xf32>
      %c0_11 = arith.constant 0 : index
      %c0_12 = arith.constant 0 : index
      %13 = vector.load %arg6[%c0_11, %c0_12] : memref<128x256xf32, #tpu.memory_space<vmem>>, vector<128x256xf32>
      tpu.vector_store %arg6[%c0_11, %c0_12], %12 {strides = array<i32>} : memref<128x256xf32, #tpu.memory_space<vmem>>, vector<128x256xf32>,
    } else {
    }
    %c0 = arith.constant 0 : index
    %c0_1 = arith.constant 0 : index
    %3 = vector.load %arg3[%c0, %c0_1] : memref<128x256xbf16, #tpu.memory_space<vmem>>, vector<128x256xbf16>
    %c0_2 = arith.constant 0 : index
    %c0_3 = arith.constant 0 : index
    %4 = vector.load %arg6[%c0_2, %c0_3] : memref<128x256xf32, #tpu.memory_space<vmem>>, vector<128x256xf32>
    %c0_4 = arith.constant 0 : index
    %c0_5 = arith.constant 0 : index
    %5 = vector.load %arg2[%c0_4, %c0_5] : memref<128x128xbf16, #tpu.memory_space<vmem>>, vector<128x128xbf16>
    %cst = arith.constant dense<0.000000e+00> : vector<128x256xf32>
    %6 = tpu.matmul %5, %3, %cst {dimension_numbers = #tpu.dot_dimension_numbers<[1], [0], [0], [1], [0, 0, 1, 1], [], []>} : vector<128x128xbf16>, vector<128x256xbf16>, vector<128x256xf32> -> vector<128x256xf32>
    %7 = arith.addf %4, %6 : vector<128x256xf32>
    %c0_6 = arith.constant 0 : index
    %c0_7 = arith.constant 0 : index
    %8 = vector.load %arg6[%c0_6, %c0_7] : memref<128x256xf32, #tpu.memory_space<vmem>>, vector<128x256xf32>
    tpu.vector_store %arg6[%c0_6, %c0_7], %7 {strides = array<i32>} : memref<128x256xf32, #tpu.memory_space<vmem>>, vector<128x256xf32>,
    %c0_i32_8 = arith.constant 0 : i32
    %9 = arith.cmpi eq, %arg1, %c0_i32_8 : i32
    %10 = arith.extui %9 : i1 to i32
    %c0_i32_9 = arith.constant 0 : i32
    %11 = arith.cmpi ne, %10, %c0_i32_9 : i32
    scf.if %11 {
      %c0_10 = arith.constant 0 : index
      %c0_11 = arith.constant 0 : index
      %12 = vector.load %arg6[%c0_10, %c0_11] : memref<128x256xf32, #tpu.memory_space<vmem>>, vector<128x256xf32>
      %cst_12 = arith.constant 0.000000e+00 : f32
      %13 = vector.broadcast %cst_12 : f32 to vector<128x256xf32>
      %14 = arith.maximumf %12, %13 : vector<128x256xf32>
      %15 = arith.truncf %14 : vector<128x256xf32> to vector<128x256xbf16>
      %c0_13 = arith.constant 0 : index
      %c0_14 = arith.constant 0 : index
      %16 = vector.load %arg4[%c0_13, %c0_14] : memref<256x128xbf16, #tpu.memory_space<vmem>>, vector<256x128xbf16>
      %cst_15 = arith.constant dense<0.000000e+00> : vector<128x128xf32>
      %17 = tpu.matmul %15, %16, %cst_15 {dimension_numbers = #tpu.dot_dimension_numbers<[1], [0], [0], [1], [0, 0, 1, 1], [], []>} : vector<128x256xbf16>, vector<256x128xbf16>, vector<128x128xf32> -> vector<128x128xf32>
      %18 = arith.truncf %17 : vector<128x128xf32> to vector<128x128xbf16>
      %c0_16 = arith.constant 0 : index
      %c0_17 = arith.constant 0 : index
      %19 = vector.load %arg5[%c0_16, %c0_17] : memref<128x128xbf16, #tpu.memory_space<vmem>>, vector<128x128xbf16>
      tpu.vector_store %arg5[%c0_16, %c0_17], %18 {strides = array<i32>} : memref<128x128xbf16, #tpu.memory_space<vmem>>, vector<128x128xbf16>,
    } else {
    }
    return
  }
  func.func @transform_0(%arg0: i32, %arg1: i32) -> (i32, i32) {
    %c0_i32 = arith.constant 0 : i32
    return %arg0, %arg1 : i32, i32
  }
  func.func @transform_1(%arg0: i32, %arg1: i32) -> (i32, i32) {
    %c0_i32 = arith.constant 0 : i32
    %c0_i32_0 = arith.constant 0 : i32
    %c0_i32_1 = arith.constant 0 : i32
    return %c0_i32, %c0_i32_0 : i32, i32
  }
  func.func @transform_2(%arg0: i32, %arg1: i32) -> (i32, i32) {
    %c0_i32 = arith.constant 0 : i32
    %c0_i32_0 = arith.constant 0 : i32
    %c0_i32_1 = arith.constant 0 : i32
    return %c0_i32, %c0_i32_0 : i32, i32
  }
  func.func @transform_3(%arg0: i32, %arg1: i32) -> (i32, i32) {
    %c0_i32 = arith.constant 0 : i32
    %c0_i32_0 = arith.constant 0 : i32
    return %arg0, %c0_i32 : i32, i32
  }
}

module attributes {stable_mosaic.version = 11 : i64} {
  func.func @_gcn_stage2_kernel(%arg0: i32, %arg1: i32, %arg2: memref<128x128xbf16, #tpu.memory_space<vmem>>, %arg3: memref<128x128xbf16, #tpu.memory_space<vmem>>, %arg4: memref<128x128xf32, #tpu.memory_space<vmem>>, %arg5: memref<128x128xf32, #tpu.memory_space<vmem>>) attributes {dimension_semantics = [#tpu.dimension_semantics<parallel>, #tpu.dimension_semantics<arbitrary>], iteration_bounds = array<i64: 1, 1>, scalar_prefetch = 0 : i64, scratch_operands = 1 : i64, tpu.core_type = #tpu.core_type<tc>, window_params = [{transform_indices = @transform_0, window_bounds = array<i64: 128, 128>}, {pipeline_mode = #tpu.pipeline_mode<synchronous>, transform_indices = @transform_1, window_bounds = array<i64: 128, 128>}, {transform_indices = @transform_2, window_bounds = array<i64: 128, 128>}]} {
    %c0_i32 = arith.constant 0 : i32
    %0 = arith.cmpi eq, %arg1, %c0_i32 : i32
    %1 = arith.extui %0 : i1 to i32
    %c0_i32_0 = arith.constant 0 : i32
    %2 = arith.cmpi ne, %1, %c0_i32_0 : i32
    scf.if %2 {
      %cst_10 = arith.constant 0.000000e+00 : f32
      %12 = vector.broadcast %cst_10 : f32 to vector<128x128xf32>
      %c0_11 = arith.constant 0 : index
      %c0_12 = arith.constant 0 : index
      %13 = vector.load %arg5[%c0_11, %c0_12] : memref<128x128xf32, #tpu.memory_space<vmem>>, vector<128x128xf32>
      tpu.vector_store %arg5[%c0_11, %c0_12], %12 {strides = array<i32>} : memref<128x128xf32, #tpu.memory_space<vmem>>, vector<128x128xf32>,
    } else {
    }
    %c0 = arith.constant 0 : index
    %c0_1 = arith.constant 0 : index
    %3 = vector.load %arg3[%c0, %c0_1] : memref<128x128xbf16, #tpu.memory_space<vmem>>, vector<128x128xbf16>
    %c0_2 = arith.constant 0 : index
    %c0_3 = arith.constant 0 : index
    %4 = vector.load %arg5[%c0_2, %c0_3] : memref<128x128xf32, #tpu.memory_space<vmem>>, vector<128x128xf32>
    %c0_4 = arith.constant 0 : index
    %c0_5 = arith.constant 0 : index
    %5 = vector.load %arg2[%c0_4, %c0_5] : memref<128x128xbf16, #tpu.memory_space<vmem>>, vector<128x128xbf16>
    %cst = arith.constant dense<0.000000e+00> : vector<128x128xf32>
    %6 = tpu.matmul %5, %3, %cst {dimension_numbers = #tpu.dot_dimension_numbers<[1], [0], [0], [1], [0, 0, 1, 1], [], []>} : vector<128x128xbf16>, vector<128x128xbf16>, vector<128x128xf32> -> vector<128x128xf32>
    %7 = arith.addf %4, %6 : vector<128x128xf32>
    %c0_6 = arith.constant 0 : index
    %c0_7 = arith.constant 0 : index
    %8 = vector.load %arg5[%c0_6, %c0_7] : memref<128x128xf32, #tpu.memory_space<vmem>>, vector<128x128xf32>
    tpu.vector_store %arg5[%c0_6, %c0_7], %7 {strides = array<i32>} : memref<128x128xf32, #tpu.memory_space<vmem>>, vector<128x128xf32>,
    %c0_i32_8 = arith.constant 0 : i32
    %9 = arith.cmpi eq, %arg1, %c0_i32_8 : i32
    %10 = arith.extui %9 : i1 to i32
    %c0_i32_9 = arith.constant 0 : i32
    %11 = arith.cmpi ne, %10, %c0_i32_9 : i32
    scf.if %11 {
      %c0_10 = arith.constant 0 : index
      %c0_11 = arith.constant 0 : index
      %12 = vector.load %arg5[%c0_10, %c0_11] : memref<128x128xf32, #tpu.memory_space<vmem>>, vector<128x128xf32>
      %c0_12 = arith.constant 0 : index
      %c0_13 = arith.constant 0 : index
      %13 = vector.load %arg4[%c0_12, %c0_13] : memref<128x128xf32, #tpu.memory_space<vmem>>, vector<128x128xf32>
      tpu.vector_store %arg4[%c0_12, %c0_13], %12 {strides = array<i32>} : memref<128x128xf32, #tpu.memory_space<vmem>>, vector<128x128xf32>,
    } else {
    }
    return
  }
  func.func @transform_0(%arg0: i32, %arg1: i32) -> (i32, i32) {
    %c0_i32 = arith.constant 0 : i32
    return %arg0, %arg1 : i32, i32
  }
  func.func @transform_1(%arg0: i32, %arg1: i32) -> (i32, i32) {
    %c0_i32 = arith.constant 0 : i32
    %c0_i32_0 = arith.constant 0 : i32
    %c0_i32_1 = arith.constant 0 : i32
    return %c0_i32, %c0_i32_0 : i32, i32
  }
  func.func @transform_2(%arg0: i32, %arg1: i32) -> (i32, i32) {
    %c0_i32 = arith.constant 0 : i32
    %c0_i32_0 = arith.constant 0 : i32
    return %arg0, %c0_i32 : i32, i32
  }
}

</mosaic_0001>

<bundles_post_ra>
// kernel: _fwd.3
= control target key start
LH: loop header
LB: loop body
LE: loop exit
PB: predicated region body
PF: predicated region fallthrough
CT: control target
= control target key end

     0   :  { %s551_s1 = inlined_call_operand.vmem [shape: bf16[128,128], index: 1, kind: input, shape index: {}]   ;;  %s552_s0 = inlined_call_operand.vmem [shape: bf16[128,128], index: 0, kind: input, shape index: {}]   ;;  %s553_s2 = inlined_call_operand.vmem [shape: f32[128,128], index: 2, kind: output, shape index: {}]  }
   0x1   :  { %v424_v0 = vld [vmem:[%s551_s1] sm:$0xff]   ;;  %v425_v1 = vld [vmem:[%s551_s1 + $0x8] sm:$0xff]   ;;  %v426_v2 = vld [vmem:[%s551_s1 + $0x10] sm:$0xff]  }
   0x2   :  { %376 = vmatprep.subr.bf16.mxu0 %v424_v0  ;;  %408 = vmatprep.subr.bf16.mxu1 %v424_v0  ;;  %v427_v3 = vld [vmem:[%s551_s1 + $0x18] sm:$0xff]   ;;  %v432_v4 = vld [vmem:[%s552_s0] sm:$0xff]   ;;  %v429_v7 = vld [vmem:[%s551_s1 + $0x28] sm:$0xff]  }
   0x3   :  { %377 = vmatpush3.bf16.msra.mxu0 %v424_v0  ;;  %416 = vmatpush3.bf16.msra.mxu1 %v424_v0  ;;  %v433_v5 = vld [vmem:[%s552_s0 + $0x20] sm:$0xff]   ;;  %v430_v8 = vld [vmem:[%s551_s1 + $0x30] sm:$0xff]   ;;  %v431_v9 = vld [vmem:[%s551_s1 + $0x38] sm:$0xff]  }
   0x4   :  { %378 = vmatprep.subr.bf16.mxu0 %v425_v1  ;;  %409 = vmatprep.subr.bf16.mxu1 %v425_v1  ;;  %v428_v6 = vld [vmem:[%s551_s1 + $0x20] sm:$0xff]   ;;  %v434_v10 = vld [vmem:[%s552_s0 + $0x8] sm:$0xff]   ;;  %v436_v12 = vld [vmem:[%s552_s0 + $0x10] sm:$0xff]  }
   0x5   :  { %392 = vmatprep.mubr.bf16.mxu0 %v432_v4  ;;  %400 = vmatprep.mubr.bf16.mxu1 %v433_v5  ;;  %v435_v11 = vld [vmem:[%s552_s0 + $0x28] sm:$0xff]   ;;  %v437_v13 = vld [vmem:[%s552_s0 + $0x30] sm:$0xff]   ;;  %v438_v14 = vld [vmem:[%s552_s0 + $0x18] sm:$0xff]  }
   0x6   :  { %v439_v15 = vld [vmem:[%s552_s0 + $0x38] sm:$0xff]  }
   0x7   :  { %379 = vmatpush3.bf16.msra.mxu0 %v425_v1  ;;  %417 = vmatpush3.bf16.msra.mxu1 %v425_v1 }
   0x8   :  { %380 = vmatprep.subr.bf16.mxu0 %v426_v2  ;;  %410 = vmatprep.subr.bf16.mxu1 %v426_v2 }
   0xb   :  { %381 = vmatpush3.bf16.msra.mxu0 %v426_v2  ;;  %418 = vmatpush3.bf16.msra.mxu1 %v426_v2 }
   0xc   :  { %382 = vmatprep.subr.bf16.mxu0 %v427_v3  ;;  %411 = vmatprep.subr.bf16.mxu1 %v427_v3 }
   0xf   :  { %383 = vmatpush3.bf16.msra.mxu0 %v427_v3  ;;  %419 = vmatpush3.bf16.msra.mxu1 %v427_v3 }
  0x10   :  { %384 = vmatprep.subr.bf16.mxu0 %v428_v6  ;;  %412 = vmatprep.subr.bf16.mxu1 %v428_v6 }
  0x13   :  { %385 = vmatpush3.bf16.msra.mxu0 %v428_v6  ;;  %420 = vmatpush3.bf16.msra.mxu1 %v428_v6 }
  0x14   :  { %386 = vmatprep.subr.bf16.mxu0 %v429_v7  ;;  %413 = vmatprep.subr.bf16.mxu1 %v429_v7 }
  0x17   :  { %387 = vmatpush3.bf16.msra.mxu0 %v429_v7  ;;  %421 = vmatpush3.bf16.msra.mxu1 %v429_v7 }
  0x18   :  { %388 = vmatprep.subr.bf16.mxu0 %v430_v8  ;;  %414 = vmatprep.subr.bf16.mxu1 %v430_v8 }
  0x1b   :  { %389 = vmatpush3.bf16.msra.mxu0 %v430_v8  ;;  %422 = vmatpush3.bf16.msra.mxu1 %v430_v8 }
  0x1c   :  { %390 = vmatprep.subr.bf16.mxu0 %v431_v9  ;;  %415 = vmatprep.subr.bf16.mxu1 %v431_v9 }
  0x1f   :  { %391 = vmatpush3.bf16.msra.mxu0 %v431_v9  ;;  %423 = vmatpush3.bf16.msra.mxu1 %v431_v9 }
  0x22   :  { %393 = vmatmul.mubr.bf16.vlgmr.msra.gmra.mrb[0].mxu0 %v434_v10  ;;  %401 = vmatmul.mubr.bf16.vlgmr.msra.gmra.mrb[0].mxu1 %v435_v11 }
  0x23   :  { %396 = vmatprep.mubr.bf16.mxu0 %v436_v12  ;;  %404 = vmatprep.mubr.bf16.mxu1 %v437_v13 }
  0x2a   :  { %397 = vmatmul.mubr.bf16.gmra.mrb[4].mxu0 %v438_v14  ;;  %405 = vmatmul.mubr.bf16.gmra.mrb[4].mxu1 %v439_v15 }
  0xf5   :  { %v394_v16 = vpop.f32.mrb[0].mxu0  ;;  %v402_v17 = vpop.f32.mrb[0].mxu1 }
  0xf6   :  { %326 = vst [vmem:[%s553_s2 + $0x10] sm:$0xff] %v394_v16  ;;  %334 = vst [vmem:[%s553_s2 + $0x50] sm:$0xff] %v402_v17  ;;  %v210_v18 = vpop.f32.mrb[1].mxu0  ;;  %v242_v19 = vpop.f32.mrb[1].mxu1 }
  0xf7   :  { %324 = vst [vmem:[%s553_s2] sm:$0xff] %v210_v18  ;;  %332 = vst [vmem:[%s553_s2 + $0x40] sm:$0xff] %v242_v19  ;;  %v395_v20 = vpop.f32.mrb[2].mxu0  ;;  %v403_v21 = vpop.f32.mrb[2].mxu1 }
  0xf8   :  { %327 = vst [vmem:[%s553_s2 + $0x18] sm:$0xff] %v395_v20  ;;  %335 = vst [vmem:[%s553_s2 + $0x58] sm:$0xff] %v403_v21  ;;  %v213_v22 = vpop.f32.mrb[3].mxu0  ;;  %v245_v23 = vpop.f32.mrb[3].mxu1 }
  0xf9   :  { %325 = vst [vmem:[%s553_s2 + $0x8] sm:$0xff] %v213_v22  ;;  %333 = vst [vmem:[%s553_s2 + $0x48] sm:$0xff] %v245_v23 }
  0xfd   :  { %v398_v24 = vpop.f32.mrb[4].mxu0  ;;  %v406_v25 = vpop.f32.mrb[4].mxu1 }
  0xfe   :  { %330 = vst [vmem:[%s553_s2 + $0x30] sm:$0xff] %v398_v24  ;;  %338 = vst [vmem:[%s553_s2 + $0x70] sm:$0xff] %v406_v25  ;;  %v226_v26 = vpop.f32.mrb[5].mxu0  ;;  %v258_v27 = vpop.f32.mrb[5].mxu1 }
  0xff   :  { %328 = vst [vmem:[%s553_s2 + $0x20] sm:$0xff] %v226_v26  ;;  %336 = vst [vmem:[%s553_s2 + $0x60] sm:$0xff] %v258_v27  ;;  %v399_v28 = vpop.f32.mrb[6].mxu0  ;;  %v407_v29 = vpop.f32.mrb[6].mxu1 }
 0x100   :  { %331 = vst [vmem:[%s553_s2 + $0x38] sm:$0xff] %v399_v28  ;;  %339 = vst [vmem:[%s553_s2 + $0x78] sm:$0xff] %v407_v29  ;;  %v229_v30 = vpop.f32.mrb[7].mxu0  ;;  %v261_v31 = vpop.f32.mrb[7].mxu1 }
 0x101   :  { %329 = vst [vmem:[%s553_s2 + $0x28] sm:$0xff] %v229_v30  ;;  %337 = vst [vmem:[%s553_s2 + $0x68] sm:$0xff] %v261_v31 }

// kernel: _fwd.2
= control target key start
LH: loop header
LB: loop body
LE: loop exit
PB: predicated region body
PF: predicated region fallthrough
CT: control target
= control target key end

     0   :  { %8 = vsyncpa [#allocation4], 0  ;;  %s1260_s0 = inlined_call_operand.hbm [shape: bf16[128,128], index: 0, kind: input, shape index: {}]   ;;  %s1261_s1 = inlined_call_operand.hbm [shape: bf16[128,256], index: 1, kind: input, shape index: {}]   ;;  %s1262_s2 = inlined_call_operand.hbm [shape: bf16[256,128], index: 2, kind: input, shape index: {}]   ;;  %s1263_s3 = inlined_call_operand.vmem [shape: bf16[128,128], index: 3, kind: output, shape index: {}]  }
   0x1   :  { %9 = vsyncpa [#allocation6], 0  ;;  %s1164_s12 = smov [#allocation5]   ;;  %s1094_s16 = scalar_lea.hbm %s1261_s1, 2048 }
   0x2   :  { %s27_s13 = sshll.u32 %s1164_s12, 4  ;;  %p1095_p0 = scmp.ne.s32.totalorder %s1261_s1, %s1094_s16  ;;  %s28_s13 = int_to_ptr.vmem [resolvable:$true] %s27_s13 }
   0x3   :  { %p1098_p1 = scmp.lt.u32.totalorder %s1094_s16, %s1261_s1 }
   0x5   :  { %p1100_p2 = pnand %p1098_p1, %p1095_p0 }
   0x7   :  { %1103 = shalt.err (!%p1100_p2)
}
   0x8   :  { %s1104_s21 = scalar_lea.vmem %s28_s13, 2048  ;;  %p1109_p4 = scmp.lt.s32.totalorder %s28_s13, %s28_s13 }
   0x9   :  { %p1105_p3 = scmp.ne.s32.totalorder %s28_s13, %s1104_s21  ;;  %p1110_p5 = scmp.lt.s32.totalorder %s1104_s21, %s1104_s21 }
   0xb   :  { %p1111_p6 = por %p1110_p5, %p1109_p4 }
   0xd   :  { %p1112_p7 = pnand %p1111_p6, %p1105_p3 }
   0xf   :  { %1115 = shalt.err (!%p1112_p7)
}
  0x10   :  { %s1165_s22 = smov 128   ;;  %s1166_s23 = smov 8  }
  0x11   :  { %33 = dma.hbm_to_vmem [thread:$0]  %s1261_s1, 2048, %s28_s13, [#allocation6], %s1165_s22, %s1165_s22, %s1166_s23  }
  0x12   :  { %s1167_s26 = smov [#allocation3]   ;;  %s1116_s30 = scalar_lea.hbm %s1260_s0, 1024 }
  0x13   :  { %s15_s27 = sshll.u32 %s1167_s26, 4  ;;  %p1117_p8 = scmp.ne.s32.totalorder %s1260_s0, %s1116_s30  ;;  %s16_s27 = int_to_ptr.vmem [resolvable:$true] %s15_s27 }
  0x14   :  { %p1120_p9 = scmp.lt.u32.totalorder %s1116_s30, %s1260_s0 }
  0x16   :  { %p1122_p10 = pnand %p1120_p9, %p1117_p8 }
  0x18   :  { %1125 = shalt.err (!%p1122_p10)
}
  0x19   :  { %s1126_s8 = scalar_lea.vmem %s16_s27, 1024  ;;  %p1131_p12 = scmp.lt.s32.totalorder %s16_s27, %s16_s27 }
  0x1a   :  { %p1127_p11 = scmp.ne.s32.totalorder %s16_s27, %s1126_s8  ;;  %p1132_p13 = scmp.lt.s32.totalorder %s1126_s8, %s1126_s8 }
  0x1c   :  { %p1133_p0 = por %p1132_p13, %p1131_p12 }
  0x1e   :  { %p1134_p1 = pnand %p1133_p0, %p1127_p11 }
  0x20   :  { %1137 = shalt.err (!%p1134_p1)
}
  0x21   :  { %s1168_s1 = smov 64   ;;  %s1169_s9 = smov 4  }
  0x22   :  { %21 = dma.hbm_to_vmem [thread:$0]  %s1260_s0, 1024, %s16_s27, [#allocation4], %s1168_s1, %s1168_s1, %s1169_s9  }
  0x23   :  { %s1170_s12 = smov [#allocation7]   ;;  %s1138_s16 = scalar_lea.hbm %s1262_s2, 2048 }
  0x24   :  { %s39_s13 = sshll.u32 %s1170_s12, 4  ;;  %p1139_p2 = scmp.ne.s32.totalorder %s1262_s2, %s1138_s16  ;;  %s40_s13 = int_to_ptr.vmem [resolvable:$true] %s39_s13 }
  0x25   :  { %p1142_p3 = scmp.lt.u32.totalorder %s1138_s16, %s1262_s2 }
  0x27   :  { %p1144_p4 = pnand %p1142_p3, %p1139_p2 }
  0x29   :  { %1147 = shalt.err (!%p1144_p4)
}
  0x2a   :  { %s1148_s21 = scalar_lea.vmem %s40_s13, 2048  ;;  %p1153_p6 = scmp.lt.s32.totalorder %s40_s13, %s40_s13 }
  0x2b   :  { %p1149_p5 = scmp.ne.s32.totalorder %s40_s13, %s1148_s21  ;;  %p1154_p7 = scmp.lt.s32.totalorder %s1148_s21, %s1148_s21 }
  0x2d   :  { %p1155_p8 = por %p1154_p7, %p1153_p6 }
  0x2f   :  { %p1156_p9 = pnand %p1155_p8, %p1149_p5 }
  0x31   :  { %1159 = shalt.err (!%p1156_p9)
}
  0x32   :  { %45 = dma.hbm_to_vmem [thread:$0]  %s1262_s2, 2048, %s40_s13, [#allocation6], %s1168_s1, %s1168_s1, %s1169_s9  }
  0x33   :  { %1160 = dma.done.wait [#allocation4], 1024  }
  0x34   :  { %1161 = vsyncadd [#allocation4], 4294966272 }
  0x35   :  { %1162 = dma.done.wait [#allocation6], 4096  }
  0x36   :  { %1163 = vsyncadd [#allocation6], 4294963200  ;;  %v1171_v0 = vmov 0   ;;  %v1046_v1 = vld [vmem:[#allocation5 + $0x4] ss:$8 sps:$4 sm:$0xff]   ;;  %v1082_v19 = vld [vmem:[#allocation7 + $0x50] sm:$0xff]  }
  0x37   :  { %316 = vmatprep.mubr.bf16.mxu0 %v1171_v0  ;;  %v1048_v2 = vld [vmem:[#allocation5] ss:$8 sps:$4 sm:$0xff]   ;;  %284 = vmatprep.subr.bf16.mxu0 %v1046_v1  ;;  %v1049_v3 = vld [vmem:[#allocation5 + $0x14] ss:$8 sps:$4 sm:$0xff]   ;;  %v1051_v4 = vld [vmem:[#allocation5 + $0x10] ss:$8 sps:$4 sm:$0xff]  }
  0x38   :  { %285 = vmatpush1.bf16.msra.mxu0 %v1048_v2  ;;  %v1052_v5 = vld [vmem:[#allocation5 + $0x24] ss:$8 sps:$4 sm:$0xff]   ;;  %v1054_v6 = vld [vmem:[#allocation5 + $0x20] ss:$8 sps:$4 sm:$0xff]   ;;  %v1055_v7 = vld [vmem:[#allocation5 + $0x34] ss:$8 sps:$4 sm:$0xff]  }
  0x39   :  { %286 = vmatprep.subr.bf16.mxu0 %v1049_v3  ;;  %v1057_v8 = vld [vmem:[#allocation5 + $0x30] ss:$8 sps:$4 sm:$0xff]   ;;  %v1058_v9 = vld [vmem:[#allocation5 + $0x44] ss:$8 sps:$4 sm:$0xff]   ;;  %v1060_v10 = vld [vmem:[#allocation5 + $0x40] ss:$8 sps:$4 sm:$0xff]  }
  0x3a   :  { %v1061_v11 = vld [vmem:[#allocation5 + $0x54] ss:$8 sps:$4 sm:$0xff]   ;;  %v1063_v12 = vld [vmem:[#allocation5 + $0x50] ss:$8 sps:$4 sm:$0xff]   ;;  %v1064_v13 = vld [vmem:[#allocation5 + $0x64] ss:$8 sps:$4 sm:$0xff]  }
  0x3b   :  { %v1078_v14 = vld [vmem:[#allocation7 + $0x40] sm:$0xff]   ;;  %v1080_v17 = vld [vmem:[#allocation7 + $0x48] sm:$0xff]   ;;  %v1067_v20 = vld [vmem:[#allocation5 + $0x74] ss:$8 sps:$4 sm:$0xff]  }
  0x3c   :  { %287 = vmatpush1.bf16.msra.mxu0 %v1051_v4  ;;  %v1079_v15 = vld [vmem:[#allocation7] sm:$0xff]   ;;  %974 = vmatprep.subr.bf16.mxu1 %v1078_v14  ;;  %v1081_v18 = vld [vmem:[#allocation7 + $0x8] sm:$0xff]   ;;  %v1069_v21 = vld [vmem:[#allocation5 + $0x70] ss:$8 sps:$4 sm:$0xff]  }
  0x3d   :  { %288 = vmatprep.subr.bf16.mxu0 %v1052_v5  ;;  %v1066_v16 = vld [vmem:[#allocation5 + $0x60] ss:$8 sps:$4 sm:$0xff]   ;;  %975 = vmatpush3.bf16.msra.mxu1 %v1079_v15  ;;  %v1083_v22 = vld [vmem:[#allocation7 + $0x10] sm:$0xff]   ;;  %v1084_v23 = vld [vmem:[#allocation7 + $0x58] sm:$0xff]  }
  0x3e   :  { %976 = vmatprep.subr.bf16.mxu1 %v1080_v17  ;;  %v1070_v24 = vld [vmem:[#allocation3] sm:$0xff]   ;;  %v1085_v25 = vld [vmem:[#allocation7 + $0x18] sm:$0xff]   ;;  %v1088_v28 = vld [vmem:[#allocation7 + $0x68] sm:$0xff]  }
  0x3f   :  { %v1086_v26 = vld [vmem:[#allocation7 + $0x60] sm:$0xff]   ;;  %v1071_v29 = vld [vmem:[#allocation3 + $0x8] sm:$0xff]   ;;  %v1072_v31 = vld [vmem:[#allocation3 + $0x10] sm:$0xff]  }
  0x40   :  { %289 = vmatpush1.bf16.msra.mxu0 %v1054_v6  ;;  %v1087_v27 = vld [vmem:[#allocation7 + $0x20] sm:$0xff]   ;;  %v1089_v30 = vld [vmem:[#allocation7 + $0x28] sm:$0xff]   ;;  %v1073_v32 = vld [vmem:[#allocation3 + $0x18] sm:$0xff]  }
  0x41   :  { %290 = vmatprep.subr.bf16.mxu0 %v1055_v7  ;;  %977 = vmatpush3.bf16.msra.mxu1 %v1081_v18  ;;  %v1074_v33 = vld [vmem:[#allocation3 + $0x20] sm:$0xff]   ;;  %v1075_v34 = vld [vmem:[#allocation3 + $0x28] sm:$0xff]   ;;  %v1076_v35 = vld [vmem:[#allocation3 + $0x30] sm:$0xff]  }
  0x42   :  { %978 = vmatprep.subr.bf16.mxu1 %v1082_v19  ;;  %v1077_v36 = vld [vmem:[#allocation3 + $0x38] sm:$0xff]   ;;  %v1090_v37 = vld [vmem:[#allocation7 + $0x70] sm:$0xff]  }
  0x43   :  { %v1091_v38 = vld [vmem:[#allocation7 + $0x30] sm:$0xff]   ;;  %v1092_v39 = vld [vmem:[#allocation7 + $0x78] sm:$0xff]  }
  0x44   :  { %291 = vmatpush1.bf16.msra.mxu0 %v1057_v8  ;;  %v1093_v40 = vld [vmem:[#allocation7 + $0x38] sm:$0xff]  }
  0x45   :  { %292 = vmatprep.subr.bf16.mxu0 %v1058_v9  ;;  %979 = vmatpush3.bf16.msra.mxu1 %v1083_v22 }
  0x46   :  { %980 = vmatprep.subr.bf16.mxu1 %v1084_v23 }
  0x48   :  { %293 = vmatpush1.bf16.msra.mxu0 %v1060_v10 }
  0x49   :  { %294 = vmatprep.subr.bf16.mxu0 %v1061_v11  ;;  %981 = vmatpush3.bf16.msra.mxu1 %v1085_v25 }
  0x4a   :  { %982 = vmatprep.subr.bf16.mxu1 %v1086_v26 }
  0x4c   :  { %295 = vmatpush1.bf16.msra.mxu0 %v1063_v12 }
  0x4d   :  { %296 = vmatprep.subr.bf16.mxu0 %v1064_v13  ;;  %983 = vmatpush3.bf16.msra.mxu1 %v1087_v27 }
  0x4e   :  { %984 = vmatprep.subr.bf16.mxu1 %v1088_v28 }
  0x50   :  { %297 = vmatpush1.bf16.msra.mxu0 %v1066_v16 }
  0x51   :  { %298 = vmatprep.subr.bf16.mxu0 %v1067_v20  ;;  %985 = vmatpush3.bf16.msra.mxu1 %v1089_v30 }
  0x52   :  { %986 = vmatprep.subr.bf16.mxu1 %v1090_v37 }
  0x54   :  { %299 = vmatpush1.bf16.msra.mxu0 %v1069_v21 }
  0x55   :  { %987 = vmatpush3.bf16.msra.mxu1 %v1091_v38 }
  0x56   :  { %988 = vmatprep.subr.bf16.mxu1 %v1092_v39 }
  0x57   :  { %317 = vmatmul.mubr.bf16.vlgmr.msra.gmra.mrb[0].mxu0 %v1070_v24 }
  0x58   :  { %326 = vmatprep.mubr.bf16.mxu0 %v1171_v0 }
  0x59   :  { %989 = vmatpush3.bf16.msra.mxu1 %v1093_v40 }
  0x5f   :  { %327 = vmatmul.mubr.bf16.gmra.mrb[4].mxu0 %v1071_v29 }
  0x60   :  { %336 = vmatprep.mubr.bf16.mxu0 %v1171_v0 }
  0x67   :  { %337 = vmatmul.mubr.bf16.gmra.mrb[8].mxu0 %v1072_v31 }
  0x68   :  { %346 = vmatprep.mubr.bf16.mxu0 %v1171_v0 }
  0x6f   :  { %347 = vmatmul.mubr.bf16.gmra.mrb[12].mxu0 %v1073_v32 }
  0x70   :  { %356 = vmatprep.mubr.bf16.mxu0 %v1171_v0 }
  0x77   :  { %357 = vmatmul.mubr.bf16.gmra.mrb[16].mxu0 %v1074_v33 }
  0x78   :  { %366 = vmatprep.mubr.bf16.mxu0 %v1171_v0 }
  0x7f   :  { %367 = vmatmul.mubr.bf16.gmra.mrb[20].mxu0 %v1075_v34 }
  0x80   :  { %376 = vmatprep.mubr.bf16.mxu0 %v1171_v0 }
  0x87   :  { %377 = vmatmul.mubr.bf16.gmra.mrb[24].mxu0 %v1076_v35 }
  0x88   :  { %386 = vmatprep.mubr.bf16.mxu0 %v1171_v0 }
  0x8f   :  { %387 = vmatmul.mubr.bf16.gmra.mrb[28].mxu0 %v1077_v36 }
 0x12a   :  { %v318_v41 = vpop.f32.mrb[0].mxu0 }
 0x12b   :  { %v320_v42 = vpop.f32.mrb[1].mxu0  ;;  %v496_v44 = vmax.f32 %v318_v41, 0.0 }
 0x12c   :  { %v322_v43 = vpop.f32.mrb[2].mxu0  ;;  %v497_v47 = vmax.f32 %v320_v42, 0.0 }
 0x12d   :  { %v498_v45 = vmax.f32 %v322_v43, 0.0  ;;  %v324_v46 = vpop.f32.mrb[3].mxu0 }
 0x12e   :  { %v499_v48 = vmax.f32 %v324_v46, 0.0 }
 0x12f   :  { %v528_v49 = vpack.c.bf16 %v498_v45, %v496_v44 }
 0x130   :  { %v529_v50 = vpack.c.bf16 %v499_v48, %v497_v47 }
 0x132   :  { %v328_v51 = vpop.f32.mrb[4].mxu0  ;;  %704 = vmatprep.mubr.bf16.mxu1 %v529_v50 }
 0x133   :  { %v330_v52 = vpop.f32.mrb[5].mxu0  ;;  %705 = vmatmul.mubr.bf16.vlgmr.msra.gmra.mrb[0].mxu1 %v528_v49  ;;  %v500_v54 = vmax.f32 %v328_v51, 0.0 }
 0x134   :  { %v332_v53 = vpop.f32.mrb[6].mxu0  ;;  %v501_v57 = vmax.f32 %v330_v52, 0.0 }
 0x135   :  { %v502_v55 = vmax.f32 %v332_v53, 0.0  ;;  %v334_v56 = vpop.f32.mrb[7].mxu0 }
 0x136   :  { %v503_v58 = vmax.f32 %v334_v56, 0.0 }
 0x137   :  { %v530_v59 = vpack.c.bf16 %v502_v55, %v500_v54 }
 0x138   :  { %v531_v60 = vpack.c.bf16 %v503_v58, %v501_v57 }
 0x13a   :  { %v338_v61 = vpop.f32.mrb[8].mxu0  ;;  %712 = vmatprep.mubr.bf16.mxu1 %v531_v60 }
 0x13b   :  { %v340_v62 = vpop.f32.mrb[9].mxu0  ;;  %713 = vmatmul.mubr.bf16.gmra.mrb[4].mxu1 %v530_v59  ;;  %v504_v0 = vmax.f32 %v338_v61, 0.0 }
 0x13c   :  { %v342_v63 = vpop.f32.mrb[10].mxu0  ;;  %v505_v3 = vmax.f32 %v340_v62, 0.0 }
 0x13d   :  { %v506_v1 = vmax.f32 %v342_v63, 0.0  ;;  %v344_v2 = vpop.f32.mrb[11].mxu0 }
 0x13e   :  { %v507_v4 = vmax.f32 %v344_v2, 0.0 }
 0x13f   :  { %v532_v5 = vpack.c.bf16 %v506_v1, %v504_v0 }
 0x140   :  { %v533_v6 = vpack.c.bf16 %v507_v4, %v505_v3 }
 0x142   :  { %v348_v7 = vpop.f32.mrb[12].mxu0  ;;  %720 = vmatprep.mubr.bf16.mxu1 %v533_v6 }
 0x143   :  { %v350_v8 = vpop.f32.mrb[13].mxu0  ;;  %721 = vmatmul.mubr.bf16.gmra.mrb[8].mxu1 %v532_v5  ;;  %v508_v10 = vmax.f32 %v348_v7, 0.0 }
 0x144   :  { %v352_v9 = vpop.f32.mrb[14].mxu0  ;;  %v509_v13 = vmax.f32 %v350_v8, 0.0 }
 0x145   :  { %v510_v11 = vmax.f32 %v352_v9, 0.0  ;;  %v354_v12 = vpop.f32.mrb[15].mxu0 }
 0x146   :  { %v511_v14 = vmax.f32 %v354_v12, 0.0 }
 0x147   :  { %v534_v15 = vpack.c.bf16 %v510_v11, %v508_v10 }
 0x148   :  { %v535_v16 = vpack.c.bf16 %v511_v14, %v509_v13 }
 0x14a   :  { %v358_v17 = vpop.f32.mrb[16].mxu0  ;;  %728 = vmatprep.mubr.bf16.mxu1 %v535_v16 }
 0x14b   :  { %v360_v18 = vpop.f32.mrb[17].mxu0  ;;  %729 = vmatmul.mubr.bf16.gmra.mrb[12].mxu1 %v534_v15  ;;  %v512_v20 = vmax.f32 %v358_v17, 0.0 }
 0x14c   :  { %v362_v19 = vpop.f32.mrb[18].mxu0  ;;  %v513_v23 = vmax.f32 %v360_v18, 0.0 }
 0x14d   :  { %v514_v21 = vmax.f32 %v362_v19, 0.0  ;;  %v364_v22 = vpop.f32.mrb[19].mxu0 }
 0x14e   :  { %v515_v24 = vmax.f32 %v364_v22, 0.0 }
 0x14f   :  { %v536_v25 = vpack.c.bf16 %v514_v21, %v512_v20 }
 0x150   :  { %v537_v26 = vpack.c.bf16 %v515_v24, %v513_v23 }
 0x152   :  { %v368_v27 = vpop.f32.mrb[20].mxu0  ;;  %736 = vmatprep.mubr.bf16.mxu1 %v537_v26 }
 0x153   :  { %v370_v28 = vpop.f32.mrb[21].mxu0  ;;  %737 = vmatmul.mubr.bf16.gmra.mrb[16].mxu1 %v536_v25  ;;  %v516_v30 = vmax.f32 %v368_v27, 0.0 }
 0x154   :  { %v372_v29 = vpop.f32.mrb[22].mxu0  ;;  %v517_v33 = vmax.f32 %v370_v28, 0.0 }
 0x155   :  { %v518_v31 = vmax.f32 %v372_v29, 0.0  ;;  %v374_v32 = vpop.f32.mrb[23].mxu0 }
 0x156   :  { %v519_v34 = vmax.f32 %v374_v32, 0.0 }
 0x157   :  { %v538_v35 = vpack.c.bf16 %v518_v31, %v516_v30 }
 0x158   :  { %v539_v36 = vpack.c.bf16 %v519_v34, %v517_v33 }
 0x15a   :  { %v378_v37 = vpop.f32.mrb[24].mxu0  ;;  %744 = vmatprep.mubr.bf16.mxu1 %v539_v36 }
 0x15b   :  { %v380_v38 = vpop.f32.mrb[25].mxu0  ;;  %745 = vmatmul.mubr.bf16.gmra.mrb[20].mxu1 %v538_v35  ;;  %v520_v40 = vmax.f32 %v378_v37, 0.0 }
 0x15c   :  { %v382_v39 = vpop.f32.mrb[26].mxu0  ;;  %v521_v43 = vmax.f32 %v380_v38, 0.0 }
 0x15d   :  { %v522_v41 = vmax.f32 %v382_v39, 0.0  ;;  %v384_v42 = vpop.f32.mrb[27].mxu0 }
 0x15e   :  { %v523_v44 = vmax.f32 %v384_v42, 0.0 }
 0x15f   :  { %v540_v45 = vpack.c.bf16 %v522_v41, %v520_v40 }
 0x160   :  { %v541_v46 = vpack.c.bf16 %v523_v44, %v521_v43 }
 0x162   :  { %v388_v47 = vpop.f32.mrb[28].mxu0  ;;  %752 = vmatprep.mubr.bf16.mxu1 %v541_v46 }
 0x163   :  { %v390_v48 = vpop.f32.mrb[29].mxu0  ;;  %753 = vmatmul.mubr.bf16.gmra.mrb[24].mxu1 %v540_v45  ;;  %v524_v50 = vmax.f32 %v388_v47, 0.0 }
 0x164   :  { %v392_v49 = vpop.f32.mrb[30].mxu0  ;;  %v525_v53 = vmax.f32 %v390_v48, 0.0 }
 0x165   :  { %v526_v51 = vmax.f32 %v392_v49, 0.0  ;;  %v394_v52 = vpop.f32.mrb[31].mxu0 }
 0x166   :  { %v527_v54 = vmax.f32 %v394_v52, 0.0 }
 0x167   :  { %v542_v55 = vpack.c.bf16 %v526_v51, %v524_v50 }
 0x168   :  { %v543_v56 = vpack.c.bf16 %v527_v54, %v525_v53 }
 0x16a   :  { %760 = vmatprep.mubr.bf16.mxu1 %v543_v56 }
 0x16b   :  { %761 = vmatmul.mubr.bf16.gmra.mrb[28].mxu1 %v542_v55 }
 0x206   :  { %v990_v57 = vpop.f32.mrb[0].mxu1 }
 0x207   :  { %v991_v58 = vpop.f32.mrb[1].mxu1 }
 0x208   :  { %v992_v59 = vadd.f32 %v991_v58, %v990_v57  ;;  %v993_v60 = vpop.f32.mrb[2].mxu1 }
 0x209   :  { %v994_v61 = vpop.f32.mrb[3].mxu1 }
 0x20a   :  { %v995_v62 = vadd.f32 %v994_v61, %v993_v60 }
 0x20c   :  { %v930_v63 = vpack.c.bf16 %v995_v62, %v992_v59 }
 0x20e   :  { %931 = vst [vmem:[%s1263_s3] sm:$0xff] %v930_v63   ;;  %v996_v0 = vpop.f32.mrb[4].mxu1 }
 0x20f   :  { %v997_v1 = vpop.f32.mrb[5].mxu1 }
 0x210   :  { %v998_v2 = vadd.f32 %v997_v1, %v996_v0  ;;  %v999_v3 = vpop.f32.mrb[6].mxu1 }
 0x211   :  { %v1000_v4 = vpop.f32.mrb[7].mxu1 }
 0x212   :  { %v1001_v5 = vadd.f32 %v1000_v4, %v999_v3 }
 0x214   :  { %v935_v6 = vpack.c.bf16 %v1001_v5, %v998_v2 }
 0x216   :  { %967 = vst [vmem:[%s1263_s3 + $0x8] sm:$0xff] %v935_v6   ;;  %v1002_v7 = vpop.f32.mrb[8].mxu1 }
 0x217   :  { %v1003_v8 = vpop.f32.mrb[9].mxu1 }
 0x218   :  { %v1004_v9 = vadd.f32 %v1003_v8, %v1002_v7  ;;  %v1005_v10 = vpop.f32.mrb[10].mxu1 }
 0x219   :  { %v1006_v11 = vpop.f32.mrb[11].mxu1 }
 0x21a   :  { %v1007_v12 = vadd.f32 %v1006_v11, %v1005_v10 }
 0x21c   :  { %v940_v13 = vpack.c.bf16 %v1007_v12, %v1004_v9 }
 0x21e   :  { %968 = vst [vmem:[%s1263_s3 + $0x10] sm:$0xff] %v940_v13   ;;  %v1008_v14 = vpop.f32.mrb[12].mxu1 }
 0x21f   :  { %v1009_v15 = vpop.f32.mrb[13].mxu1 }
 0x220   :  { %v1010_v16 = vadd.f32 %v1009_v15, %v1008_v14  ;;  %v1011_v17 = vpop.f32.mrb[14].mxu1 }
 0x221   :  { %v1012_v18 = vpop.f32.mrb[15].mxu1 }
 0x222   :  { %v1013_v19 = vadd.f32 %v1012_v18, %v1011_v17 }
 0x224   :  { %v945_v20 = vpack.c.bf16 %v1013_v19, %v1010_v16 }
 0x226   :  { %969 = vst [vmem:[%s1263_s3 + $0x18] sm:$0xff] %v945_v20   ;;  %v1014_v21 = vpop.f32.mrb[16].mxu1 }
 0x227   :  { %v1015_v22 = vpop.f32.mrb[17].mxu1 }
 0x228   :  { %v1016_v23 = vadd.f32 %v1015_v22, %v1014_v21  ;;  %v1017_v24 = vpop.f32.mrb[18].mxu1 }
 0x229   :  { %v1018_v25 = vpop.f32.mrb[19].mxu1 }
 0x22a   :  { %v1019_v26 = vadd.f32 %v1018_v25, %v1017_v24 }
 0x22c   :  { %v950_v27 = vpack.c.bf16 %v1019_v26, %v1016_v23 }
 0x22e   :  { %970 = vst [vmem:[%s1263_s3 + $0x20] sm:$0xff] %v950_v27   ;;  %v1020_v28 = vpop.f32.mrb[20].mxu1 }
 0x22f   :  { %v1021_v29 = vpop.f32.mrb[21].mxu1 }
 0x230   :  { %v1022_v30 = vadd.f32 %v1021_v29, %v1020_v28  ;;  %v1023_v31 = vpop.f32.mrb[22].mxu1 }
 0x231   :  { %v1024_v32 = vpop.f32.mrb[23].mxu1 }
 0x232   :  { %v1025_v33 = vadd.f32 %v1024_v32, %v1023_v31 }
 0x234   :  { %v955_v34 = vpack.c.bf16 %v1025_v33, %v1022_v30 }
 0x236   :  { %971 = vst [vmem:[%s1263_s3 + $0x28] sm:$0xff] %v955_v34   ;;  %v1026_v35 = vpop.f32.mrb[24].mxu1 }
 0x237   :  { %v1027_v36 = vpop.f32.mrb[25].mxu1 }
 0x238   :  { %v1028_v37 = vadd.f32 %v1027_v36, %v1026_v35  ;;  %v1029_v38 = vpop.f32.mrb[26].mxu1 }
 0x239   :  { %v1030_v39 = vpop.f32.mrb[27].mxu1 }
 0x23a   :  { %v1031_v40 = vadd.f32 %v1030_v39, %v1029_v38 }
 0x23c   :  { %v960_v41 = vpack.c.bf16 %v1031_v40, %v1028_v37 }
 0x23e   :  { %972 = vst [vmem:[%s1263_s3 + $0x30] sm:$0xff] %v960_v41   ;;  %v1032_v42 = vpop.f32.mrb[28].mxu1 }
 0x23f   :  { %v1033_v43 = vpop.f32.mrb[29].mxu1 }
 0x240   :  { %v1034_v44 = vadd.f32 %v1033_v43, %v1032_v42  ;;  %v1035_v45 = vpop.f32.mrb[30].mxu1 }
 0x241   :  { %v1036_v46 = vpop.f32.mrb[31].mxu1 }
 0x242   :  { %v1037_v47 = vadd.f32 %v1036_v46, %v1035_v45 }
 0x244   :  { %v965_v48 = vpack.c.bf16 %v1037_v47, %v1034_v44 }
 0x246   :  { %973 = vst [vmem:[%s1263_s3 + $0x38] sm:$0xff] %v965_v48  }
 0x247   :  { %853 = vsyncpa [#allocation4], 1 }
 0x248   :  { %854 = vsyncpa [#allocation6], 1 }

</bundles_post_ra>
